<compile_context>
chip_gen: v6e
topology: v6e:2x2x1
jax: 0.10.0
libtpu: 0.0.40
codegen_flags: <defaults>
</compile_context>

<pallas_src>
import jax
import jax.numpy as jnp
from jax import lax
from jax.experimental import pallas as pl
from jax.experimental.pallas import tpu as pltpu


def _make_gsorth_kernel(C, r, hw, inv_counts):
    """Kernel factory.  `hw` is the (possibly 128-padded) flattened spatial size."""

    def kernel(x_ref, out_ref):
        # x_ref: (TB, C*hw), out_ref: (TB, r*hw); batch on sublanes, space on lanes.
        # Channel sum in f32 via 128-aligned lane slices (no sublane relayout).
        xs = x_ref[:, 0:hw].astype(jnp.float32)
        for c in range(1, C):
            xs = xs + x_ref[:, c * hw:(c + 1) * hw].astype(jnp.float32)

        lane_mod = lax.broadcasted_iota(jnp.int32, xs.shape, 1) % r

        # r is small & static -> unrolled; each pass is one XLU lane-reduce +
        # one VPU select + one lane-dense aligned store, trivially hidden under
        # the HBM DMA.  (For large r this could be a single xs @ mask matmul on
        # the otherwise-idle MXU, but DMA dominates for typical r.)
        for i in range(r):
            m = lane_mod == i
            seg = jnp.sum(jnp.where(m, xs, 0.0), axis=-1, keepdims=True)   # (TB, 1) f32
            chunk = jnp.where(m, seg * inv_counts[i], 0.0)                 # (TB, hw) f32
            out_ref[:, i * hw:(i + 1) * hw] = chunk.astype(out_ref.dtype)

    return kernel


def _vmem_budgets():
    """Return (vmem_limit_bytes, tile_budget_bytes) derived from physical VMEM."""
    try:
        cap = int(pltpu.get_tpu_info().vmem_capacity_bytes)
    except Exception:
        cap = 64 * 1024 * 1024  # conservative (v7x-sized) fallback
    # 128 MiB parts (v5e/v6e) -> limit 96 MiB, tile budget 48 MiB.
    # 64  MiB parts (v7x)     -> limit 48 MiB, tile budget 24 MiB.
    limit = max(16 << 20, min((cap * 3) // 4, cap - (16 << 20)))
    return limit, limit // 2


def _choose_batch_tile(B, C, R, hw, in_isz, out_isz, budget, min_steps=4):
    """Largest legal (sublane-aligned or full-dim) batch tile fitting `budget`."""
    sub = {4: 8, 2: 16, 1: 32}.get(int(in_isz), 8)          # sublane packing of dtype
    # Double-buffered in+out tiles plus f32 intermediates (xs / mask / chunk).
    per_b = 2 * (C * hw * in_isz + R * hw * out_isz) + 4 * hw * 4
    fit = max(1, int(budget // per_b))
    if fit >= B:
        if B >= min_steps * sub:         # keep >=min_steps steps so the pipeline
            return (B // min_steps) // sub * sub   # (and megacore split) engage
        return B                         # tiny batch: single full-array block
    if fit >= sub:
        return (fit // sub) * sub        # VMEM-limited, sublane-aligned
    return B if B < sub else sub         # degenerate fallback: smallest legal tile


def gsorth_forward(x, r):
    """Pallas GSOrth forward; returns (B, r, H, W) matching the PyTorch module."""
    B, C, H, W = x.shape
    HW = H * W
    hw = ((HW + 127) // 128) * 128       # lane-density guard

    x3 = x.reshape(B, C, HW)
    if hw != HW:
        x3 = jnp.pad(x3, ((0, 0), (0, 0), (0, hw - HW)))
    xf = x3.reshape(B, C * hw)           # contiguous -> free reshape when unpadded

    # Per-basis-row nonzero counts from the *original* HW (matches PyTorch even
    # when HW % r != 0); padded lanes are zero so the sums are unaffected.
    inv_counts = tuple(1.0 / len(range(i, HW, r)) for i in range(r))

    vmem_limit, tile_budget = _vmem_budgets()
    itemsize = xf.dtype.itemsize
    TB = _choose_batch_tile(B, C, r, hw, itemsize, itemsize, tile_budget)
    grid = (pl.cdiv(B, TB),)

    out = pl.pallas_call(
        _make_gsorth_kernel(C, r, hw, inv_counts),
        out_shape=jax.ShapeDtypeStruct((B, r * hw), x.dtype),
        grid_spec=pltpu.PrefetchScalarGridSpec(
            num_scalar_prefetch=0,
            grid=grid,
            in_specs=[pl.BlockSpec((TB, C * hw), lambda i: (i, 0))],
            out_specs=pl.BlockSpec((TB, r * hw), lambda i: (i, 0)),
        ),
        compiler_params=pltpu.CompilerParams(
            dimension_semantics=("parallel",),   # shard batch tiles across TCs
            vmem_limit_bytes=vmem_limit,
        ),
    )(xf)

    out = out.reshape(B, r, hw)
    if hw != HW:
        out = out[:, :, :HW]
    return out.reshape(B, r, H, W)


def make_basis(r, h, w, dtype=jnp.float32):
    """Deterministic basis identical to the PyTorch __init__ (for the reference)."""
    hw = h * w
    idx = jnp.arange(hw)
    mask = (idx[None, :] % r) == jnp.arange(r)[:, None]          # (r, hw)
    vec = mask.astype(dtype)
    vec = vec / jnp.linalg.norm(vec, axis=1, keepdims=True)
    return vec.reshape(r, h, w)


def gsorth_reference(x, basis):
    """Pure-JAX reference matching the PyTorch forward."""
    coeff = jnp.einsum("bchw,rhw->br", x, basis)                 # (B, R)
    return coeff[:, :, None, None] * basis[None, :, :, :]        # (B, R, H, W)


if __name__ == "__main__":
    B, C, H, W = 2, 4, 16, 16
    R = 4

    key = jax.random.PRNGKey(0)
    x = jax.random.normal(key, (B, C, H, W), dtype=jnp.float32)

    out = jax.block_until_ready(gsorth_forward(x, R))

    basis = make_basis(R, H, W)
    ref = gsorth_reference(x, basis)

    assert out.shape == (B, R, H, W)
    assert jnp.allclose(out, ref, atol=1e-5, rtol=1e-5), "mismatch vs reference"

    print("KERNEL_OK")
</pallas_src>

<mosaic_0001>
module attributes {stable_mosaic.version = 11 : i64} {
  func.func @kernel(%arg0: i32, %arg1: memref<2x1024xf32, #tpu.memory_space<vmem>>, %arg2: memref<2x1024xf32, #tpu.memory_space<vmem>>) attributes {dimension_semantics = [#tpu.dimension_semantics<parallel>], iteration_bounds = array<i64: 1>, scalar_prefetch = 0 : i64, scratch_operands = 0 : i64, tpu.core_type = #tpu.core_type<tc>, window_params = [{transform_indices = @transform_0, window_bounds = array<i64: 2, 1024>}, {transform_indices = @transform_1, window_bounds = array<i64: 2, 1024>}]} {
    %c0 = arith.constant 0 : index
    %c0_0 = arith.constant 0 : index
    %0 = vector.load %arg1[%c0, %c0_0] : memref<2x1024xf32, #tpu.memory_space<vmem>>, vector<2x256xf32>
    %c0_1 = arith.constant 0 : index
    %c256 = arith.constant 256 : index
    %1 = vector.load %arg1[%c0_1, %c256] : memref<2x1024xf32, #tpu.memory_space<vmem>>, vector<2x256xf32>
    %2 = arith.addf %0, %1 : vector<2x256xf32>
    %c0_2 = arith.constant 0 : index
    %c512 = arith.constant 512 : index
    %3 = vector.load %arg1[%c0_2, %c512] : memref<2x1024xf32, #tpu.memory_space<vmem>>, vector<2x256xf32>
    %4 = arith.addf %2, %3 : vector<2x256xf32>
    %c0_3 = arith.constant 0 : index
    %c768 = arith.constant 768 : index
    %5 = vector.load %arg1[%c0_3, %c768] : memref<2x1024xf32, #tpu.memory_space<vmem>>, vector<2x256xf32>
    %6 = arith.addf %4, %5 : vector<2x256xf32>
    %7 = tpu.iota {dimensions = array<i32: 1>} : vector<2x256xi32>
    %c4_i32 = arith.constant 4 : i32
    %c0_i32 = arith.constant 0 : i32
    %8 = arith.cmpi eq, %c4_i32, %c0_i32 : i32
    %c1_i32 = arith.constant 1 : i32
    %9 = arith.select %8, %c1_i32, %c4_i32 : i32
    %10 = vector.broadcast %9 : i32 to vector<2x256xi32>
    %11 = arith.remsi %7, %10 : vector<2x256xi32>
    %c0_i32_4 = arith.constant 0 : i32
    %12 = vector.broadcast %c0_i32_4 : i32 to vector<2x256xi32>
    %13 = arith.cmpi ne, %11, %12 : vector<2x256xi32>
    %c0_i32_5 = arith.constant 0 : i32
    %14 = vector.broadcast %c0_i32_5 : i32 to vector<2x256xi32>
    %15 = arith.cmpi slt, %11, %14 : vector<2x256xi32>
    %c0_i32_6 = arith.constant 0 : i32
    %16 = arith.cmpi slt, %9, %c0_i32_6 : i32
    %17 = vector.broadcast %16 : i1 to vector<2x256xi1>
    %18 = vector.broadcast %17 : vector<2x256xi1> to vector<2x256xi1>
    %19 = arith.xori %15, %18 : vector<2x256xi1>
    %20 = arith.andi %19, %13 : vector<2x256xi1>
    %21 = vector.broadcast %9 : i32 to vector<2x256xi32>
    %22 = arith.addi %11, %21 : vector<2x256xi32>
    %23 = arith.select %20, %22, %11 : vector<2x256xi1>, vector<2x256xi32>
    %c0_i32_7 = arith.constant 0 : i32
    %24 = vector.broadcast %c0_i32_7 : i32 to vector<2x256xi32>
    %25 = arith.cmpi eq, %23, %24 : vector<2x256xi32>
    %cst = arith.constant 0.000000e+00 : f32
    %26 = vector.broadcast %cst : f32 to vector<2x256xf32>
    %27 = arith.select %25, %6, %26 : vector<2x256xi1>, vector<2x256xf32>
    %cst_8 = arith.constant dense<0.000000e+00> : vector<2xf32>
    %28 = vector.multi_reduction <add>, %27, %cst_8 [1] : vector<2x256xf32> to vector<2xf32>
    %29 = vector.shape_cast %28 : vector<2xf32> to vector<2x1xf32>
    %cst_9 = arith.constant 1.562500e-02 : f32
    %30 = vector.broadcast %cst_9 : f32 to vector<2x1xf32>
    %31 = arith.mulf %29, %30 : vector<2x1xf32>
    %cst_10 = arith.constant 0.000000e+00 : f32
    %32 = vector.shape_cast %31 : vector<2x1xf32> to vector<2x1xf32>
    %33 = vector.broadcast %32 : vector<2x1xf32> to vector<2x256xf32>
    %34 = vector.broadcast %cst_10 : f32 to vector<2x256xf32>
    %35 = arith.select %25, %33, %34 : vector<2x256xi1>, vector<2x256xf32>
    %c0_11 = arith.constant 0 : index
    %c0_12 = arith.constant 0 : index
    %36 = vector.load %arg2[%c0_11, %c0_12] : memref<2x1024xf32, #tpu.memory_space<vmem>>, vector<2x256xf32>
    tpu.vector_store %arg2[%c0_11, %c0_12], %35 {strides = array<i32>} : memref<2x1024xf32, #tpu.memory_space<vmem>>, vector<2x256xf32>,
    %c1_i32_13 = arith.constant 1 : i32
    %37 = vector.broadcast %c1_i32_13 : i32 to vector<2x256xi32>
    %38 = arith.cmpi eq, %23, %37 : vector<2x256xi32>
    %cst_14 = arith.constant 0.000000e+00 : f32
    %39 = vector.broadcast %cst_14 : f32 to vector<2x256xf32>
    %40 = arith.select %38, %6, %39 : vector<2x256xi1>, vector<2x256xf32>
    %cst_15 = arith.constant dense<0.000000e+00> : vector<2xf32>
    %41 = vector.multi_reduction <add>, %40, %cst_15 [1] : vector<2x256xf32> to vector<2xf32>
    %42 = vector.shape_cast %41 : vector<2xf32> to vector<2x1xf32>
    %cst_16 = arith.constant 1.562500e-02 : f32
    %43 = vector.broadcast %cst_16 : f32 to vector<2x1xf32>
    %44 = arith.mulf %42, %43 : vector<2x1xf32>
    %cst_17 = arith.constant 0.000000e+00 : f32
    %45 = vector.shape_cast %44 : vector<2x1xf32> to vector<2x1xf32>
    %46 = vector.broadcast %45 : vector<2x1xf32> to vector<2x256xf32>
    %47 = vector.broadcast %cst_17 : f32 to vector<2x256xf32>
    %48 = arith.select %38, %46, %47 : vector<2x256xi1>, vector<2x256xf32>
    %c0_18 = arith.constant 0 : index
    %c256_19 = arith.constant 256 : index
    %49 = vector.load %arg2[%c0_18, %c256_19] : memref<2x1024xf32, #tpu.memory_space<vmem>>, vector<2x256xf32>
    tpu.vector_store %arg2[%c0_18, %c256_19], %48 {strides = array<i32>} : memref<2x1024xf32, #tpu.memory_space<vmem>>, vector<2x256xf32>,
    %c2_i32 = arith.constant 2 : i32
    %50 = vector.broadcast %c2_i32 : i32 to vector<2x256xi32>
    %51 = arith.cmpi eq, %23, %50 : vector<2x256xi32>
    %cst_20 = arith.constant 0.000000e+00 : f32
    %52 = vector.broadcast %cst_20 : f32 to vector<2x256xf32>
    %53 = arith.select %51, %6, %52 : vector<2x256xi1>, vector<2x256xf32>
    %cst_21 = arith.constant dense<0.000000e+00> : vector<2xf32>
    %54 = vector.multi_reduction <add>, %53, %cst_21 [1] : vector<2x256xf32> to vector<2xf32>
    %55 = vector.shape_cast %54 : vector<2xf32> to vector<2x1xf32>
    %cst_22 = arith.constant 1.562500e-02 : f32
    %56 = vector.broadcast %cst_22 : f32 to vector<2x1xf32>
    %57 = arith.mulf %55, %56 : vector<2x1xf32>
    %cst_23 = arith.constant 0.000000e+00 : f32
    %58 = vector.shape_cast %57 : vector<2x1xf32> to vector<2x1xf32>
    %59 = vector.broadcast %58 : vector<2x1xf32> to vector<2x256xf32>
    %60 = vector.broadcast %cst_23 : f32 to vector<2x256xf32>
    %61 = arith.select %51, %59, %60 : vector<2x256xi1>, vector<2x256xf32>
    %c0_24 = arith.constant 0 : index
    %c512_25 = arith.constant 512 : index
    %62 = vector.load %arg2[%c0_24, %c512_25] : memref<2x1024xf32, #tpu.memory_space<vmem>>, vector<2x256xf32>
    tpu.vector_store %arg2[%c0_24, %c512_25], %61 {strides = array<i32>} : memref<2x1024xf32, #tpu.memory_space<vmem>>, vector<2x256xf32>,
    %c3_i32 = arith.constant 3 : i32
    %63 = vector.broadcast %c3_i32 : i32 to vector<2x256xi32>
    %64 = arith.cmpi eq, %23, %63 : vector<2x256xi32>
    %cst_26 = arith.constant 0.000000e+00 : f32
    %65 = vector.broadcast %cst_26 : f32 to vector<2x256xf32>
    %66 = arith.select %64, %6, %65 : vector<2x256xi1>, vector<2x256xf32>
    %cst_27 = arith.constant dense<0.000000e+00> : vector<2xf32>
    %67 = vector.multi_reduction <add>, %66, %cst_27 [1] : vector<2x256xf32> to vector<2xf32>
    %68 = vector.shape_cast %67 : vector<2xf32> to vector<2x1xf32>
    %cst_28 = arith.constant 1.562500e-02 : f32
    %69 = vector.broadcast %cst_28 : f32 to vector<2x1xf32>
    %70 = arith.mulf %68, %69 : vector<2x1xf32>
    %cst_29 = arith.constant 0.000000e+00 : f32
    %71 = vector.shape_cast %70 : vector<2x1xf32> to vector<2x1xf32>
    %72 = vector.broadcast %71 : vector<2x1xf32> to vector<2x256xf32>
    %73 = vector.broadcast %cst_29 : f32 to vector<2x256xf32>
    %74 = arith.select %64, %72, %73 : vector<2x256xi1>, vector<2x256xf32>
    %c0_30 = arith.constant 0 : index
    %c768_31 = arith.constant 768 : index
    %75 = vector.load %arg2[%c0_30, %c768_31] : memref<2x1024xf32, #tpu.memory_space<vmem>>, vector<2x256xf32>
    tpu.vector_store %arg2[%c0_30, %c768_31], %74 {strides = array<i32>} : memref<2x1024xf32, #tpu.memory_space<vmem>>, vector<2x256xf32>,
    return
  }
  func.func @transform_0(%arg0: i32) -> (i32, i32) {
    %c0_i32 = arith.constant 0 : i32
    %c0_i32_0 = arith.constant 0 : i32
    return %arg0, %c0_i32 : i32, i32
  }
  func.func @transform_1(%arg0: i32) -> (i32, i32) {
    %c0_i32 = arith.constant 0 : i32
    %c0_i32_0 = arith.constant 0 : i32
    return %arg0, %c0_i32 : i32, i32
  }
}

</mosaic_0001>

<bundles_post_ra>
// kernel: tpu_custom_call.1
= control target key start
LH: loop header
LB: loop body
LE: loop exit
PB: predicated region body
PF: predicated region fallthrough
CT: control target
= control target key end

     0   :  { %6 = vsyncpa [#allocation3], 0  ;;  %s272_s0 = inlined_call_operand.hbm [shape: f32[2,1024], index: 0, kind: input, shape index: {}]   ;;  %s273_s1 = inlined_call_operand.hbm [shape: f32[2,1024], index: 1, kind: output, shape index: {}]  }
   0x1   :  { %7 = vsyncpa [#allocation4], 0  ;;  %s229_s6 = smov [#allocation2]  }
   0x2   :  { %s14_s7 = sshll.u32 %s229_s6, 4  ;;  %s15_s7 = int_to_ptr.vmem [resolvable:$true] %s14_s7 }
   0x3   :  { %s193_s8 = scalar_lea.vmem %s15_s7, 256  ;;  %p198_p1 = scmp.lt.s32.totalorder %s15_s7, %s15_s7 }
   0x4   :  { %p194_p0 = scmp.ne.s32.totalorder %s15_s7, %s193_s8  ;;  %p199_p2 = scmp.lt.s32.totalorder %s193_s8, %s193_s8 }
   0x6   :  { %p200_p3 = por %p199_p2, %p198_p1 }
   0x8   :  { %p201_p4 = pnand %p200_p3, %p194_p0 }
   0xa   :  { %204 = shalt.err (!%p201_p4)
}
   0xb   :  { %17 = dma.hbm_to_vmem [thread:$0]  %s272_s0, 256, %s15_s7, [#allocation3]  }
   0xc   :  { %225 = dma.done.wait [#allocation3], 256  }
   0xd   :  { %226 = vsyncadd [#allocation3], 4294967040  ;;  %v28_v0 = vlaneseq  ;;  %v230_v2 = vmov 1983009808   ;;  %v21_v7 = vld [vmem:[#allocation2] sm:$0xf] }
   0xe   :  { %v59_v3 = vunpack.c.l.s4 %v230_v2  ;;  %v22_v8 = vld [vmem:[#allocation2 + $0x4] sm:$0xf]  ;;  %v24_v9 = vld [vmem:[#allocation2 + $0x8] sm:$0xf]  ;;  %v26_v11 = vld [vmem:[#allocation2 + $0xc] sm:$0xf] }
   0xf   :  { %v29_v1 = vand.u32 127, %v28_v0  ;;  %v62_v6 = vshrl.u32 %v28_v0, 7  ;;  %v23_v10 = vadd.f32 %v22_v8, %v21_v7  ;;  %vm70_vm3 = vcmask 1041408   ;;  %s231_s0 = smov [#allocation5]  }
  0x10   :  { %v60_v5 = vunpack.c.0.s8 %v59_v3  ;;  %s169_s11 = sshll.u32 %s231_s0, 4  ;;  %s170_s11 = int_to_ptr.vmem [resolvable:$true] %s169_s11 }
  0x11   :  { %v30_v4 = vadd.s32 128, %v29_v1  ;;  %v35_v12 = vand.u32 3, %v29_v1  ;;  %v25_v13 = vadd.f32 %v24_v9, %v23_v10  ;;  %s205_s12 = scalar_lea.vmem %s170_s11, 256  ;;  %p210_p6 = scmp.lt.s32.totalorder %s170_s11, %s170_s11 }
  0x12   :  { %v63_v14 = vsub.s32 %v60_v5, %v62_v6  ;;  %p206_p5 = scmp.ne.s32.totalorder %s170_s11, %s205_s12  ;;  %p211_p7 = scmp.lt.s32.totalorder %s205_s12, %s205_s12 }
  0x13   :  { %v42_v15 = vand.u32 3, %v30_v4  ;;  %v27_v16 = vadd.f32 %v26_v11, %v25_v13  ;;  %vm115_vm0 = vcmp.eq.s32.totalorder %v35_v12, 2  ;;  %vm55_vm1 = vcmp.eq.s32.totalorder %v35_v12, 0 }
  0x14   :  { %vm139_vm2 = vcmp.eq.s32.totalorder %v35_v12, 3  ;;  %vm91_vm4 = vcmp.eq.s32.totalorder %v35_v12, 1  ;;  %p212_p8 = por %p211_p7, %p210_p6 }
  0x15   :  { %v64_v17 = vrot.slane %v27_v16, %v63_v14  ;;  %vm116_vm5 = vcmp.eq.s32.totalorder %v42_v15, 2  ;;  %vm56_vm6 = vcmp.eq.s32.totalorder %v42_v15, 0  ;;  %vm140_vm7 = vcmp.eq.s32.totalorder %v42_v15, 3 }
  0x16   :  { %vm92_vm8 = vcmp.eq.s32.totalorder %v42_v15, 1  ;;  %p213_p9 = pnand %p212_p8, %p206_p5 }
  0x17   :  { %v65_v18 = vcombine.high %v64_v17, %v64_v17  ;;  %v117_v19 = vsel %vm115_vm0, %v64_v17, 0.0  ;;  %v68_v20 = vsel %vm55_vm1, %v64_v17, 0.0  ;;  %v141_v21 = vsel %vm139_vm2, %v64_v17, 0.0 }
  0x18   :  { %v119_v22 = vsel %vm70_vm3, %v117_v19, 0.0  ;;  %v71_v23 = vsel %vm70_vm3, %v68_v20, 0.0  ;;  %v143_v24 = vsel %vm70_vm3, %v141_v21, 0.0  ;;  %v93_v25 = vsel %vm91_vm4, %v64_v17, 0.0 }
  0x19   :  { %v118_v26 = vsel %vm116_vm5, %v65_v18, 0.0  ;;  %v69_v27 = vsel %vm56_vm6, %v65_v18, 0.0  ;;  %v142_v28 = vsel %vm140_vm7, %v65_v18, 0.0  ;;  %v94_v29 = vsel %vm92_vm8, %v65_v18, 0.0 }
  0x1a   :  { %v120_v30 = vsel %vm70_vm3, %v118_v26, 0.0  ;;  %v72_v31 = vsel %vm70_vm3, %v69_v27, 0.0  ;;  %v144_v32 = vsel %vm70_vm3, %v142_v28, 0.0  ;;  %v95_v33 = vsel %vm70_vm3, %v93_v25, 0.0 }
  0x1b   :  { %v121_v34 = vadd.f32 %v120_v30, %v119_v22  ;;  %v73_v35 = vadd.f32 %v72_v31, %v71_v23  ;;  %v96_v36 = vsel %vm70_vm3, %v94_v29, 0.0  ;;  %v145_v37 = vadd.f32 %v144_v32, %v143_v24 }
  0x1c   :  { %v97_v38 = vadd.f32 %v96_v36, %v95_v33 }
  0x1d   :  { %122 = vadd.xlane.f32.xlu1 %v121_v34  ;;  %74 = vadd.xlane.f32.xlu0 %v73_v35 }
  0x21   :  { %146 = vadd.xlane.f32.xlu1 %v145_v37  ;;  %98 = vadd.xlane.f32.xlu0 %v97_v38 }
  0xa6   :  { %v123_v39 = vpop.xlane.xlu1 %122  ;;  %v75_v40 = vpop.xlane.xlu0 %74 }
  0xa7   :  { %v124_v41 = vmul.f32 0.015625, %v123_v39  ;;  %v76_v42 = vmul.f32 0.015625, %v75_v40 }
  0xa9   :  { %v125_v43 = vsel %vm115_vm0, %v124_v41, 0.0  ;;  %v126_v44 = vsel %vm116_vm5, %v124_v41, 0.0  ;;  %v77_v45 = vsel %vm55_vm1, %v76_v42, 0.0  ;;  %v78_v46 = vsel %vm56_vm6, %v76_v42, 0.0 }
  0xaa   :  { %v129_v47 = vcombine.low %v125_v43, %v126_v44  ;;  %v81_v48 = vcombine.low %v77_v45, %v78_v46  ;;  %v147_v49 = vpop.xlane.xlu1 %146  ;;  %v99_v50 = vpop.xlane.xlu0 %98 }
  0xab   :  { %v148_v51 = vmul.f32 0.015625, %v147_v49  ;;  %v100_v52 = vmul.f32 0.015625, %v99_v50 }
  0xac   :  { %180 = vst.sshfl [vmem:[#allocation5 + $0x8] sm:$0x33 pattern:$0x76325410] %v129_v47 }
  0xad   :  { %178 = vst.sshfl [vmem:[#allocation5] sm:$0x33 pattern:$0x76325410] %v81_v48  ;;  %v149_v53 = vsel %vm139_vm2, %v148_v51, 0.0  ;;  %v150_v54 = vsel %vm140_vm7, %v148_v51, 0.0 }
  0xae   :  { %v101_v55 = vsel %vm91_vm4, %v100_v52, 0.0  ;;  %v102_v56 = vsel %vm92_vm8, %v100_v52, 0.0  ;;  %v153_v57 = vcombine.low %v149_v53, %v150_v54 }
  0xaf   :  { %v105_v58 = vcombine.low %v101_v55, %v102_v56 }
  0xb0   :  { %181 = vst.sshfl [vmem:[#allocation5 + $0xc] sm:$0x33 pattern:$0x76325410] %v153_v57 }
  0xb1   :  { %179 = vst.sshfl [vmem:[#allocation5 + $0x4] sm:$0x33 pattern:$0x76325410] %v105_v58 }
  0xb2   :  { %216 = shalt.err (!%p213_p9)
}
  0xb3   :  { %172 = dma.vmem_to_hbm [thread:$0]  %s170_s11, 256, %s273_s1, [#allocation4]  }
  0xb4   :  { %227 = dma.done.wait [#allocation4], 256  }
  0xb5   :  { %228 = vsyncadd [#allocation4], 4294967040 }
  0xb6   :  { %176 = vsyncpa [#allocation3], 1 }
  0xb7   :  { %177 = vsyncpa [#allocation4], 1 }

</bundles_post_ra>
